<compile_context>
chip_gen: v6e
topology: v6e:2x2x1
jax: 0.10.0
libtpu: 0.0.40
codegen_flags: <defaults>
</compile_context>

<pallas_src>
import jax
import jax.numpy as jnp
from jax.experimental import pallas as pl
from jax.experimental.pallas import tpu as pltpu


def _affine_drop_path_kernel(x_ref, scale_ref, samp_ref, o_ref):
    # x_ref:     (C, T_blk)  activation tile of one batch element
    # scale_ref: (C, 1)      learned per-channel scale (Layer-Scale gamma)
    # samp_ref:  (1, 1)      per-sample stochastic-depth factor (mask/keep_prob or 1)
    # o_ref:     (C, T_blk)
    coeff = scale_ref[...].astype(jnp.float32) * samp_ref[...].astype(jnp.float32)
    o_ref[...] = (x_ref[...].astype(jnp.float32) * coeff).astype(o_ref.dtype)


def _pick_t_block(T, max_blk=1024):
    """Largest lane-aligned (multiple-of-128) divisor of T up to max_blk, else full T."""
    if T % 128 == 0:
        blk = min(T, max_blk)
        blk -= blk % 128
        while blk > 0 and T % blk != 0:
            blk -= 128
        if blk > 0:
            return blk
    return T


def _apply_affine_scale(x, scale_c1, samp_b11, *, t_block=None):
    B, C, T = x.shape
    T_blk = _pick_t_block(T) if t_block is None else t_block
    assert T % T_blk == 0
    grid = (B, T // T_blk)

    return pl.pallas_call(
        _affine_drop_path_kernel,
        out_shape=jax.ShapeDtypeStruct((B, C, T), x.dtype),
        grid_spec=pltpu.PrefetchScalarGridSpec(
            num_scalar_prefetch=0,
            grid=grid,
            in_specs=[
                # x: batch squeezed, lane-dense time tile
                pl.BlockSpec((None, C, T_blk), lambda b, t: (b, 0, t)),
                # per-channel scale: grid-invariant tiny block
                pl.BlockSpec((C, 1), lambda b, t: (0, 0)),
                # per-sample drop-path factor: one scalar per batch element
                pl.BlockSpec((None, 1, 1), lambda b, t: (b, 0, 0)),
            ],
            out_specs=pl.BlockSpec((None, C, T_blk), lambda b, t: (b, 0, t)),
        ),
        compiler_params=pltpu.CompilerParams(
            dimension_semantics=("parallel", "parallel")),
    )(x, scale_c1, samp_b11)


def affine_drop_path(x, scale, *, drop_prob=0.0, training=False, key=None,
                     t_block=None):
    """Pallas equivalent of AffineDropPath.forward.

    x:     (B, C, T) activations
    scale: (1, C, 1) learned per-channel scale (init ~1e-4 in the module)
    """
    B, C, T = x.shape
    assert scale.shape == (1, C, 1)

    if drop_prob == 0.0 or not training:
        samp = jnp.ones((B, 1, 1), jnp.float32)
    else:
        assert key is not None, "training-mode drop_path needs a PRNG key"
        keep_prob = 1.0 - drop_prob
        # Bernoulli(keep_prob) via floor(keep_prob + U[0,1)), matching the torch code.
        u = jax.random.uniform(key, (B, 1, 1), dtype=jnp.float32)
        keep = jnp.floor(keep_prob + u)
        samp = keep / keep_prob

    scale_c1 = scale.reshape(C, 1).astype(jnp.float32)
    return _apply_affine_scale(x, scale_c1, samp, t_block=t_block)


def _reference(x, scale, drop_prob, training, key):
    y = scale * x
    if drop_prob == 0.0 or not training:
        return y
    keep_prob = 1.0 - drop_prob
    u = jax.random.uniform(key, (x.shape[0], 1, 1), dtype=jnp.float32)
    mask = jnp.floor(keep_prob + u)
    return y / keep_prob * mask


if __name__ == "__main__":
    B, C, T = 2, 4, 16
    key = jax.random.PRNGKey(0)
    kx, kd = jax.random.split(key)

    x = jax.random.normal(kx, (B, C, T), dtype=jnp.float32)
    # per-channel scale (module inits to a constant 1e-4; vary it slightly so the
    # channel broadcast is actually exercised)
    scale = (1e-4 * (1.0 + jnp.arange(C, dtype=jnp.float32))).reshape(1, C, 1)

    # --- eval / drop_prob == 0 path: out = scale * x ---
    out_eval = jax.block_until_ready(affine_drop_path(x, scale))
    ref_eval = _reference(x, scale, 0.0, False, None)
    assert out_eval.shape == x.shape
    assert jnp.allclose(out_eval, ref_eval, atol=1e-6, rtol=1e-6)

    # --- training path: per-sample stochastic depth ---
    drop_prob = 0.3
    out_train = jax.block_until_ready(
        affine_drop_path(x, scale, drop_prob=drop_prob, training=True, key=kd))
    ref_train = _reference(x, scale, drop_prob, True, kd)
    assert jnp.allclose(out_train, ref_train, atol=1e-5, rtol=1e-5)

    # --- lane-aligned shape exercising the (B, T-tile) grid (two T tiles) ---
    B2, C2, T2 = 2, 8, 256
    x2 = jax.random.normal(kx, (B2, C2, T2), dtype=jnp.float32)
    scale2 = 1e-4 * jnp.ones((1, C2, 1), jnp.float32)
    out2 = jax.block_until_ready(affine_drop_path(x2, scale2, t_block=128))
    assert jnp.allclose(out2, scale2 * x2, atol=1e-6, rtol=1e-6)

    print("KERNEL_OK")
</pallas_src>

<mosaic_0001>
module attributes {stable_mosaic.version = 11 : i64} {
  func.func @_affine_drop_path_kernel(%arg0: i32, %arg1: i32, %arg2: memref<1x4x16xf32, #tpu.memory_space<vmem>>, %arg3: memref<4x1xf32, #tpu.memory_space<vmem>>, %arg4: memref<1x1x1xf32, #tpu.memory_space<vmem>>, %arg5: memref<1x4x16xf32, #tpu.memory_space<vmem>>) attributes {dimension_semantics = [#tpu.dimension_semantics<parallel>, #tpu.dimension_semantics<parallel>], iteration_bounds = array<i64: 2, 1>, scalar_prefetch = 0 : i64, scratch_operands = 0 : i64, tpu.core_type = #tpu.core_type<tc>, window_params = [{transform_indices = @transform_0, window_bounds = array<i64: 1, 4, 16>}, {pipeline_mode = #tpu.pipeline_mode<synchronous>, transform_indices = @transform_1, window_bounds = array<i64: 4, 1>}, {transform_indices = @transform_2, window_bounds = array<i64: 1, 1, 1>}, {transform_indices = @transform_3, window_bounds = array<i64: 1, 4, 16>}]} {
    %c0 = arith.constant 0 : index
    %c0_0 = arith.constant 0 : index
    %0 = vector.load %arg3[%c0, %c0_0] : memref<4x1xf32, #tpu.memory_space<vmem>>, vector<4x1xf32>
    %c0_1 = arith.constant 0 : index
    %c0_2 = arith.constant 0 : index
    %c0_3 = arith.constant 0 : index
    %1 = vector.load %arg4[%c0_1, %c0_2, %c0_3] : memref<1x1x1xf32, #tpu.memory_space<vmem>>, vector<1x1x1xf32>
    %2 = vector.shape_cast %1 : vector<1x1x1xf32> to vector<1x1xf32>
    %3 = vector.broadcast %2 : vector<1x1xf32> to vector<4x1xf32>
    %4 = arith.mulf %0, %3 : vector<4x1xf32>
    %c0_4 = arith.constant 0 : index
    %c0_5 = arith.constant 0 : index
    %c0_6 = arith.constant 0 : index
    %5 = vector.load %arg2[%c0_4, %c0_5, %c0_6] : memref<1x4x16xf32, #tpu.memory_space<vmem>>, vector<1x4x16xf32>
    %6 = vector.shape_cast %5 : vector<1x4x16xf32> to vector<4x16xf32>
    %7 = vector.broadcast %4 : vector<4x1xf32> to vector<4x16xf32>
    %8 = arith.mulf %6, %7 : vector<4x16xf32>
    %c0_7 = arith.constant 0 : index
    %c0_8 = arith.constant 0 : index
    %c0_9 = arith.constant 0 : index
    %9 = vector.load %arg5[%c0_7, %c0_8, %c0_9] : memref<1x4x16xf32, #tpu.memory_space<vmem>>, vector<1x4x16xf32>
    %10 = vector.shape_cast %9 : vector<1x4x16xf32> to vector<4x16xf32>
    %11 = vector.shape_cast %8 : vector<4x16xf32> to vector<1x4x16xf32>
    tpu.vector_store %arg5[%c0_7, %c0_8, %c0_9], %11 {strides = array<i32>} : memref<1x4x16xf32, #tpu.memory_space<vmem>>, vector<1x4x16xf32>,
    return
  }
  func.func @transform_0(%arg0: i32, %arg1: i32) -> (i32, i32, i32) {
    %c0_i32 = arith.constant 0 : i32
    %c0_i32_0 = arith.constant 0 : i32
    return %arg0, %c0_i32, %arg1 : i32, i32, i32
  }
  func.func @transform_1(%arg0: i32, %arg1: i32) -> (i32, i32) {
    %c0_i32 = arith.constant 0 : i32
    %c0_i32_0 = arith.constant 0 : i32
    %c0_i32_1 = arith.constant 0 : i32
    return %c0_i32, %c0_i32_0 : i32, i32
  }
  func.func @transform_2(%arg0: i32, %arg1: i32) -> (i32, i32, i32) {
    %c0_i32 = arith.constant 0 : i32
    %c0_i32_0 = arith.constant 0 : i32
    %c0_i32_1 = arith.constant 0 : i32
    return %arg0, %c0_i32, %c0_i32_0 : i32, i32, i32
  }
  func.func @transform_3(%arg0: i32, %arg1: i32) -> (i32, i32, i32) {
    %c0_i32 = arith.constant 0 : i32
    %c0_i32_0 = arith.constant 0 : i32
    return %arg0, %c0_i32, %arg1 : i32, i32, i32
  }
}

</mosaic_0001>

<bundles_post_ra>
// kernel: tpu_custom_call.1
= control target key start
LH: loop header
LB: loop body
LE: loop exit
PB: predicated region body
PF: predicated region fallthrough
CT: control target
= control target key end

     0   :  { %8 = vsyncpa [#allocation3], 0  ;;  %s592_s0 = inlined_call_operand.vmem [shape: f32[2,4,16], index: 0, kind: input, shape index: {}]   ;;  %s593_s1 = inlined_call_operand.vmem [shape: f32[4,1], index: 1, kind: input, shape index: {}]   ;;  %s594_s2 = inlined_call_operand.vmem [shape: f32[2,1,1], index: 2, kind: input, shape index: {}]   ;;  %s595_s3 = inlined_call_operand.hbm [shape: f32[2,4,16], index: 3, kind: output, shape index: {}]  }
   0x1   :  { %10 = vsyncpa [#allocation3 + $0x1], 0  ;;  %s487_s12 = smov 0   ;;  %s489_s13 = smov 0  }
   0x2   :  { %s491_s14 = smov 0   ;;  %s493_s15 = smov 0  }
   0x3   :  { %s495_s16 = smov 0   ;;  %s497_s17 = smov 0  }
   0x4 LB: > { %s318_s18 = sadd.s32 4294967295, %s463_s17   ;;  %s319_s19 = sadd.s32 4294967294, %s463_s17   ;;  %s463_s17 = sphi %s497_s17, %s16_s17   ;;  %s459_s16 = sphi %s495_s16, %s602_s16   ;;  %s455_s15 = sphi %s493_s15, %s601_s15   ;;  %s451_s14 = sphi %s491_s14, %s600_s14   ;;  %s447_s13 = sphi %s489_s13, %s599_s13   ;;  %s443_s12 = sphi %s487_s12, %s598_s12  }
   0x5   : > { %s28_s20 = sadd.s32 1, %s459_s16  ;;  %s112_s21 = sadd.s32 1, %s451_s14 }
   0x6   : > { %p30_p0 = scmp.ge.s32.totalorder %s28_s20, 2  ;;  %p122_p1 = scmp.ne.s32.totalorder %s451_s14, %s447_s13 }
   0x7   : > { %p123_p2 = scmp.eq.s32.totalorder %s318_s18, 1  ;;  %p128_p3 = scmp.ne.s32.totalorder %s447_s13, %s443_s12 }
   0x8   : > { %s604_s20 = smov (%p30_p0, %s28_s20), 0  ;;  %p129_p5 = scmp.eq.s32.totalorder %s319_s19, 1 }
   0x9   : > { %p527_p4 = por %p123_p2, %p122_p1  ;;  %s107_s23 = ssub.s32 %s459_s16, %s604_s20 }
   0xa   : > { %p322_p6 = scmp.ge.s32.totalorder %s463_s17, 1  ;;  %p110_p7 = scmp.eq.s32.totalorder %s107_s23, 0 }
   0xb   : > { %p534_p8 = por %p129_p5, %p128_p3  ;;  %p166_p9 = scmp.lt.s32.totalorder %s463_s17, 3 }
   0xc   : > { %s540_s25 = scalar_select %p110_p7, %s451_s14, %s112_s21  }
   0xd   : > { %p167_p10 = pnand %p322_p6, %p166_p9 }
   0xe   : > { %p195_p11 = scmp.lt.s32.totalorder (!%p167_p10), %s455_s15, 1  ;;  %s192_s5 = sand.u32 (!%p167_p10), 1, %s447_s13  }
   0xf   : > { %170 = sbr.rel (%p167_p10) target bundleno = 165 (0xa5), region = 32  ;;  %s323_s7 = sshll.u32 (!%p167_p10), %s192_s5, 2 }
  0x10   : > { %s327_s11 = sshll.u32 (!%p167_p10), %s455_s15, 6  ;;  %s194_s18 = scalar_lea.vmem (!%p167_p10), [#allocation2], %s323_s7 }
  0x11   : > { %s238_s19 = sshll.u32 (!%p167_p10), %s194_s18, 4  ;;  %s236_s27 = scalar_lea.hbm (!%p167_p10), %s595_s3, %s327_s11  ;;  %s239_s19 = int_to_ptr.vmem [resolvable:$true] %s238_s19 }
  0x12   : > { %s387_s28 = scalar_lea.vmem (!%p167_p10), %s239_s19, 64  ;;  %s466_s29 = smov (!%p167_p10), [#allocation2]  }
  0x13   : > { %p388_p12 = scmp.ne.s32.totalorder (!%p167_p10), %s239_s19, %s387_s28  ;;  %s391_s30 = sshll.u32 (!%p167_p10), %s466_s29, 4  ;;  %s392_s30 = int_to_ptr.vmem [resolvable:$false] %s391_s30 }
  0x14   : > { %v465_v0 = vmov 0   ;;  %s196_s26 = scalar_select %p195_p11, %s455_s15, 1  ;;  %v205_v1 = vld [vmem:[%s593_s1] sm:$0xf]  ;;  %vm221_vm0 = vcmask 125952  }
  0x15   : > { %386 = vset.pattern.permute.xlu0 %v465_v0  ;;  %p389_p13 = pnand %p388_p12, %p527_p4  ;;  %s393_s15 = scalar_lea.vmem %s392_s30, 128 }
  0x16   : > { %s204_s4 = scalar_lea.vmem %s594_s2, %s196_s26  ;;  %s324_s6 = sshll.u32 %s196_s26, 2 }
  0x17   : > { %v325_v2 = vld [vmem:[%s204_s4] ss:$0 sm:$0xff]  ;;  %s201_s10 = scalar_lea.vmem %s592_s0, %s324_s6  ;;  %s224_s26 = scalar_lea.sflag [#allocation3], %s192_s5 }
  0x18   : > { %v213_v3 = vmul.f32 %v325_v2, %v205_v1  ;;  %v214_v4 = vld [vmem:[%s201_s10] sm:$0xf]  ;;  %p390_p0 = pneg %p389_p13  ;;  %p394_p1 = scmp.lt.s32.totalorder %s239_s19, %s392_s30 }
  0x19   : > { %p395_p2 = scmp.lt.s32.totalorder %s393_s15, %s387_s28 }
  0x1a   : > { %217 = vperm.xlu0 %386, %v213_v3  }
  0x1b   : > { %p396_p3 = por %p395_p2, %p394_p1 }
  0x1d   : > { %p397_p5 = pnand %p396_p3, %p390_p0 }
  0x95   : > { %v218_v5 = vpop.permute.xlu0 %217 }
  0x96   : > { %v220_v6 = vmul.f32 %v218_v5, %v214_v4 }
  0x98   : > { %222 = vst.msk [vmem:[%s194_s18] sm:$0xf] %vm221_vm0, %v220_v6 }
  0x99   : > { %400 = shalt.err (!%p397_p5)
}
  0x9a   : > { %s401_s4 = scalar_lea.hbm %s236_s27, 64  ;;  %s405_s7 = scalar_lea.hbm %s595_s3, 128 }
  0x9b   : > { %p402_p6 = scmp.ne.s32.totalorder %s236_s27, %s401_s4  ;;  %p406_p10 = scmp.lt.s32.totalorder %s236_s27, %s595_s3 }
  0x9c   : > { %p407_p11 = scmp.lt.s32.totalorder %s405_s7, %s401_s4 }
  0x9d   : > { %p403_p7 = pnand %p402_p6, %p527_p4 }
  0x9e   : > { %p408_p12 = por %p407_p11, %p406_p10 }
  0x9f   : > { %p404_p9 = pneg %p403_p7 }
  0xa1   : > { %p409_p13 = pnand %p408_p12, %p404_p9 }
  0xa3   : > { %412 = shalt.err (!%p409_p13)
}
  0xa4   : > { %330 = dma.vmem_to_hbm [thread:$0]  (%p527_p4), %s239_s19, 64, %s236_s27, %s224_s26  }
  0xa5 PF: > { %p336_p0 = scmp.ge.s32.totalorder %s463_s17, 2  ;;  %s250_s10 = sand.u32 1, %s443_s12  }
  0xa6   : > { %s251_s11 = scalar_lea.sflag [#allocation3], %s250_s10 }
  0xa7   : > { %p333_p1 = pnand %p336_p0, %p534_p8 }
  0xa9   : > { %p334_p2 = pneg %p333_p1 }
  0xab   : > { %438 = dma.done.wait (%p334_p2), %s251_s11, 64  }
  0xac   : > { %440 = vsyncadd (%p334_p2), %s251_s11, 4294967232  ;;  %s16_s17 = sadd.s32 1, %s463_s17   ;;  %s598_s12 = smov %s447_s13 }
  0xad   : > { %p13_p3 = scmp.ge.s32.totalorder %s16_s17, 4   ;;  %s599_s13 = smov %s451_s14 }
  0xae   : > { %s600_s14 = smov %s540_s25  ;;  %s601_s15 = smov %s459_s16 }
  0xaf   : > { %s602_s16 = smov %s604_s20  ;;  %15 = sbr.rel (!%p13_p3) target bundleno = 4 (0x4), region = 70 }
  0xb4   :  { %256 = vsyncpa [#allocation3], 1 }
  0xb5   :  { %258 = vsyncpa [#allocation3 + $0x1], 1 }

</bundles_post_ra>
